<compile_context>
chip_gen: v7x
topology: tpu7x:2x2x1
jax: 0.10.0
libtpu: 0.0.40
codegen_flags: <defaults>
</compile_context>

<pallas_src>
import functools

import jax
import jax.numpy as jnp
from jax.experimental import pallas as pl
from jax.experimental.pallas import tpu as pltpu

EPS = 1e-5


def _round_up(x, m):
    return ((x + m - 1) // m) * m


# ---------------------------------------------------------------------------
# Pallas kernel: full-K (im2col-matmul) conv + folded-BN shift (+ReLU)(+residual)
# ---------------------------------------------------------------------------
def _fused_matmul_affine_kernel(*refs, apply_relu, add_residual):
    if add_residual:
        p_ref, w_ref, shift_ref, res_ref, o_ref = refs
    else:
        p_ref, w_ref, shift_ref, o_ref = refs
        res_ref = None

    # bf16 x bf16 -> f32 on the MXU; full K lives in this tile, so no
    # accumulator scratch and no per-k VMEM read-modify-write.
    y = jnp.dot(p_ref[...], w_ref[...], preferred_element_type=jnp.float32)
    y = y + shift_ref[...]                     # BN scale already folded into weights
    if apply_relu:
        y = jnp.maximum(y, 0.0)
    if add_residual:
        y = y + res_ref[...].astype(jnp.float32)   # bf16 residual, f32 add
    o_ref[...] = y.astype(o_ref.dtype)


def _pad2(a, rows, cols, dtype):
    a = a.astype(dtype)
    pr, pc = rows - a.shape[0], cols - a.shape[1]
    if pr or pc:
        a = jnp.pad(a, ((0, pr), (0, pc)))
    return a


def fused_matmul_affine(patches, w, shift, residual=None, apply_relu=True,
                        out_dtype=jnp.float32, *, tm=1024, tn=512):
    """out = [relu](patches @ w + shift) [+ residual], full-K tiles, pipelined."""
    M, K = patches.shape
    Kw, N = w.shape
    assert K == Kw

    # Full K per tile (ResNet K = 9*Cin <= 4608 -> <= ~9 MiB of bf16 at tm=1024).
    Kp = _round_up(K, 128)
    # Cout <= 512 for all ResNet18 blocks -> a single lane-dense N tile, so the
    # weight strip's block index is i-invariant and stays VMEM-resident.
    tn_e = min(tn, _round_up(N, 128))
    Np = _round_up(N, tn_e)
    tm_e = min(tm, _round_up(M, 8))
    Mp = _round_up(M, tm_e)

    args = [
        _pad2(patches, Mp, Kp, jnp.bfloat16),      # bf16 MXU operands
        _pad2(w, Kp, Np, jnp.bfloat16),
        _pad2(shift.reshape(1, N), 1, Np, jnp.float32),
    ]
    in_specs = [
        pl.BlockSpec((tm_e, Kp), lambda i, j: (i, 0)),
        pl.BlockSpec((Kp, tn_e), lambda i, j: (0, j)),   # i-invariant -> resident
        pl.BlockSpec((1, tn_e), lambda i, j: (0, j)),
    ]
    if residual is not None:
        # bf16 residual: half the DMA bytes / VMEM footprint, f32 add in-register.
        args.append(_pad2(residual, Mp, Np, jnp.bfloat16))
        in_specs.append(pl.BlockSpec((tm_e, tn_e), lambda i, j: (i, j)))

    kernel = functools.partial(_fused_matmul_affine_kernel,
                               apply_relu=apply_relu,
                               add_residual=residual is not None)
    out = pl.pallas_call(
        kernel,
        out_shape=jax.ShapeDtypeStruct((Mp, Np), out_dtype),
        grid_spec=pltpu.PrefetchScalarGridSpec(
            num_scalar_prefetch=0,
            grid=(Mp // tm_e, Np // tn_e),
            in_specs=in_specs,
            out_specs=pl.BlockSpec((tm_e, tn_e), lambda i, j: (i, j)),
        ),
        compiler_params=pltpu.CompilerParams(
            dimension_semantics=("parallel", "parallel"),
            # ~35 MiB peak at tm=1024, K=4608, N=512 with double buffering;
            # fits v7x (64 MiB physical), comfortable on v5e/v6e (128 MiB).
            vmem_limit_bytes=48 * 1024 * 1024,
        ),
    )(*args)
    return out[:M, :N]


# ---------------------------------------------------------------------------
# Glue: im2col patch extraction (plain JAX, layout plumbing only, bf16 in/out)
# ---------------------------------------------------------------------------
def im2col(x_nhwc, ksize, stride, pad):
    B, H, W, C = x_nhwc.shape
    xp = jnp.pad(x_nhwc, ((0, 0), (pad, pad), (pad, pad), (0, 0)))
    Ho = (H + 2 * pad - ksize) // stride + 1
    Wo = (W + 2 * pad - ksize) // stride + 1
    cols = []
    for kh in range(ksize):
        for kw in range(ksize):
            cols.append(
                xp[:, kh:kh + stride * Ho:stride, kw:kw + stride * Wo:stride, :]
            )
    patches = jnp.concatenate(cols, axis=-1)  # (B, Ho, Wo, k*k*C)
    return patches.reshape(B * Ho * Wo, ksize * ksize * C), Ho, Wo


def _bn_fold_into_weights(w_mat, gamma, beta, mean, var, conv_bias=None):
    """Fold eval-mode BN (and conv bias) into weight columns + per-channel shift."""
    scale = gamma / jnp.sqrt(var + EPS)
    bias = conv_bias if conv_bias is not None else 0.0
    shift = beta + scale * (bias - mean)
    return w_mat * scale[None, :], shift


# ---------------------------------------------------------------------------
# ResBlack forward (NCHW in / NCHW out), compute inside Pallas kernels
# ---------------------------------------------------------------------------
def res_black_forward(x_nchw, p, stride):
    x = jnp.transpose(x_nchw, (0, 2, 3, 1)).astype(jnp.float32)  # NHWC
    x_lo = x.astype(jnp.bfloat16)  # matmul operands / intermediates in bf16
    B, H, W, Cin = x.shape
    Cout = p["w1"].shape[-1]

    # --- conv1 (3x3, stride) + BN1 + ReLU --- (bf16 intermediate output)
    p1, Ho, Wo = im2col(x_lo, 3, stride, 1)
    w1, sh1 = _bn_fold_into_weights(p["w1"].reshape(9 * Cin, Cout),
                                    p["g1"], p["be1"], p["m1"], p["v1"],
                                    p["cb1"])
    y1 = fused_matmul_affine(p1, w1, sh1, apply_relu=True,
                             out_dtype=jnp.bfloat16)

    # --- shortcut branch (bf16 residual; f32 add happens in the epilogue) ---
    if Cin != Cout:
        # 1x1 conv, stride, no bias, + BN
        xs = x_lo[:, ::stride, ::stride, :].reshape(B * Ho * Wo, Cin)
        ws, shs = _bn_fold_into_weights(p["ws"], p["gs"], p["bes"],
                                        p["ms"], p["vs"])
        residual = fused_matmul_affine(xs, ws, shs, apply_relu=False,
                                       out_dtype=jnp.bfloat16)
    else:
        # identity shortcut: only valid for stride == 1 (as in PyTorch usage)
        assert stride == 1, "identity shortcut requires stride == 1"
        residual = x_lo.reshape(B * H * W, Cin)

    # --- conv2 (3x3, stride 1) + BN2 + ReLU, residual added in the epilogue ---
    p2, _, _ = im2col(y1.reshape(B, Ho, Wo, Cout), 3, 1, 1)
    w2, sh2 = _bn_fold_into_weights(p["w2"].reshape(9 * Cout, Cout),
                                    p["g2"], p["be2"], p["m2"], p["v2"],
                                    p["cb2"])
    out = fused_matmul_affine(p2, w2, sh2, residual=residual, apply_relu=True,
                              out_dtype=jnp.float32)
    out = out.reshape(B, Ho, Wo, Cout)
    return jnp.transpose(out, (0, 3, 1, 2))  # back to NCHW


# ---------------------------------------------------------------------------
# Deterministic parameter init (shapes from ResBlack.__init__)
# ---------------------------------------------------------------------------
def init_resblack_params(key, cin, cout):
    ks = jax.random.split(key, 16)
    n = lambda k, shape, s=0.1: s * jax.random.normal(k, shape, jnp.float32)
    u = lambda k, shape: jax.random.uniform(k, shape, jnp.float32, 0.5, 1.5)
    p = {
        # conv1 3x3 (HWIO) + bias, BN1
        "w1": n(ks[0], (3, 3, cin, cout)), "cb1": n(ks[1], (cout,)),
        "g1": u(ks[2], (cout,)), "be1": n(ks[3], (cout,)),
        "m1": n(ks[4], (cout,)), "v1": u(ks[5], (cout,)),
        # conv2 3x3 (HWIO) + bias, BN2
        "w2": n(ks[6], (3, 3, cout, cout)), "cb2": n(ks[7], (cout,)),
        "g2": u(ks[8], (cout,)), "be2": n(ks[9], (cout,)),
        "m2": n(ks[10], (cout,)), "v2": u(ks[11], (cout,)),
    }
    if cin != cout:
        p.update({
            # shortcut 1x1 conv (no bias) + BN
            "ws": n(ks[12], (cin, cout)),
            "gs": u(ks[13], (cout,)), "bes": n(ks[14], (cout,)),
            "ms": n(ks[15], (cout,)), "vs": u(jax.random.fold_in(key, 99), (cout,)),
        })
    return p


# ---------------------------------------------------------------------------
# Pure-JAX reference (for correctness check) -- matches PyTorch ResBlack:
#   out = relu(bn2(conv2(relu(bn1(conv1(x)))))) + shortcut(x)
# ---------------------------------------------------------------------------
def ref_res_black(x_nchw, p, stride):
    x = jnp.transpose(x_nchw, (0, 2, 3, 1)).astype(jnp.float32)

    def conv(z, w, s, pad):
        return jax.lax.conv_general_dilated(
            z, w, (s, s), [(pad, pad), (pad, pad)],
            dimension_numbers=("NHWC", "HWIO", "NHWC"))

    def bn(z, g, b, m, v):
        return g * (z - m) / jnp.sqrt(v + EPS) + b

    y = conv(x, p["w1"], stride, 1) + p["cb1"]
    y = jax.nn.relu(bn(y, p["g1"], p["be1"], p["m1"], p["v1"]))
    y = conv(y, p["w2"], 1, 1) + p["cb2"]
    y = jax.nn.relu(bn(y, p["g2"], p["be2"], p["m2"], p["v2"]))

    cin, cout = x.shape[-1], p["w1"].shape[-1]
    if cin != cout:
        r = conv(x, p["ws"].reshape(1, 1, cin, cout), stride, 0)
        r = bn(r, p["gs"], p["bes"], p["ms"], p["vs"])
    else:
        r = x
    out = y + r
    return jnp.transpose(out, (0, 3, 1, 2))


if __name__ == "__main__":
    key = jax.random.PRNGKey(0)
    kx, kp = jax.random.split(key)

    B, Cin, H, W = 2, 4, 16, 16
    x = jax.random.normal(kx, (B, Cin, H, W), jnp.float32)

    fwd = jax.jit(res_black_forward, static_argnums=2)

    # Case 1: projection shortcut (in_channels != out_channels, stride=2)
    Cout, stride = 8, 2
    params = init_resblack_params(kp, Cin, Cout)
    out = jax.block_until_ready(fwd(x, params, stride))
    ref = ref_res_black(x, params, stride)
    assert out.shape == (B, Cout, H // stride, W // stride), out.shape
    # bf16 matmul operands + bf16 intermediates -> looser tolerance than pure f32.
    assert jnp.allclose(out, ref, atol=5e-2, rtol=5e-2), \
        float(jnp.max(jnp.abs(out - ref)))

    # Case 2: identity shortcut (in_channels == out_channels, stride=1)
    params2 = init_resblack_params(jax.random.PRNGKey(1), Cin, Cin)
    out2 = jax.block_until_ready(fwd(x, params2, 1))
    ref2 = ref_res_black(x, params2, 1)
    assert out2.shape == (B, Cin, H, W), out2.shape
    assert jnp.allclose(out2, ref2, atol=5e-2, rtol=5e-2), \
        float(jnp.max(jnp.abs(out2 - ref2)))

    print("KERNEL_OK")
</pallas_src>

<mosaic_0001>
module attributes {stable_mosaic.version = 11 : i64} {
  func.func @_fused_matmul_affine_kernel(%arg0: i32, %arg1: i32, %arg2: memref<128x128xbf16, #tpu.memory_space<vmem>>, %arg3: memref<128x128xbf16, #tpu.memory_space<vmem>>, %arg4: memref<1x128xf32, #tpu.memory_space<vmem>>, %arg5: memref<128x128xbf16, #tpu.memory_space<vmem>>) attributes {dimension_semantics = [#tpu.dimension_semantics<parallel>, #tpu.dimension_semantics<parallel>], iteration_bounds = array<i64: 1, 1>, scalar_prefetch = 0 : i64, scratch_operands = 0 : i64, tpu.core_type = #tpu.core_type<tc>, window_params = [{transform_indices = @transform_0, window_bounds = array<i64: 128, 128>}, {transform_indices = @transform_1, window_bounds = array<i64: 128, 128>}, {transform_indices = @transform_2, window_bounds = array<i64: 1, 128>}, {transform_indices = @transform_3, window_bounds = array<i64: 128, 128>}]} {
    %c0 = arith.constant 0 : index
    %c0_0 = arith.constant 0 : index
    %0 = vector.load %arg2[%c0, %c0_0] : memref<128x128xbf16, #tpu.memory_space<vmem>>, vector<128x128xbf16>
    %c0_1 = arith.constant 0 : index
    %c0_2 = arith.constant 0 : index
    %1 = vector.load %arg3[%c0_1, %c0_2] : memref<128x128xbf16, #tpu.memory_space<vmem>>, vector<128x128xbf16>
    %cst = arith.constant dense<0.000000e+00> : vector<128x128xf32>
    %2 = tpu.matmul %0, %1, %cst {dimension_numbers = #tpu.dot_dimension_numbers<[1], [0], [0], [1], [0, 0, 1, 1], [], []>} : vector<128x128xbf16>, vector<128x128xbf16>, vector<128x128xf32> -> vector<128x128xf32>
    %c0_3 = arith.constant 0 : index
    %c0_4 = arith.constant 0 : index
    %3 = vector.load %arg4[%c0_3, %c0_4] : memref<1x128xf32, #tpu.memory_space<vmem>>, vector<1x128xf32>
    %4 = vector.broadcast %3 : vector<1x128xf32> to vector<128x128xf32>
    %5 = arith.addf %2, %4 : vector<128x128xf32>
    %cst_5 = arith.constant 0.000000e+00 : f32
    %6 = vector.broadcast %cst_5 : f32 to vector<128x128xf32>
    %7 = arith.maximumf %5, %6 : vector<128x128xf32>
    %8 = arith.truncf %7 : vector<128x128xf32> to vector<128x128xbf16>
    %c0_6 = arith.constant 0 : index
    %c0_7 = arith.constant 0 : index
    %9 = vector.load %arg5[%c0_6, %c0_7] : memref<128x128xbf16, #tpu.memory_space<vmem>>, vector<128x128xbf16>
    tpu.vector_store %arg5[%c0_6, %c0_7], %8 {strides = array<i32>} : memref<128x128xbf16, #tpu.memory_space<vmem>>, vector<128x128xbf16>,
    return
  }
  func.func @transform_0(%arg0: i32, %arg1: i32) -> (i32, i32) {
    %c0_i32 = arith.constant 0 : i32
    %c0_i32_0 = arith.constant 0 : i32
    return %arg0, %c0_i32 : i32, i32
  }
  func.func @transform_1(%arg0: i32, %arg1: i32) -> (i32, i32) {
    %c0_i32 = arith.constant 0 : i32
    %c0_i32_0 = arith.constant 0 : i32
    return %c0_i32, %arg1 : i32, i32
  }
  func.func @transform_2(%arg0: i32, %arg1: i32) -> (i32, i32) {
    %c0_i32 = arith.constant 0 : i32
    %c0_i32_0 = arith.constant 0 : i32
    return %c0_i32, %arg1 : i32, i32
  }
  func.func @transform_3(%arg0: i32, %arg1: i32) -> (i32, i32) {
    %c0_i32 = arith.constant 0 : i32
    return %arg0, %arg1 : i32, i32
  }
}

module attributes {stable_mosaic.version = 11 : i64} {
  func.func @_fused_matmul_affine_kernel(%arg0: i32, %arg1: i32, %arg2: memref<128x128xbf16, #tpu.memory_space<vmem>>, %arg3: memref<128x128xbf16, #tpu.memory_space<vmem>>, %arg4: memref<1x128xf32, #tpu.memory_space<vmem>>, %arg5: memref<128x128xbf16, #tpu.memory_space<vmem>>) attributes {dimension_semantics = [#tpu.dimension_semantics<parallel>, #tpu.dimension_semantics<parallel>], iteration_bounds = array<i64: 1, 1>, scalar_prefetch = 0 : i64, scratch_operands = 0 : i64, tpu.core_type = #tpu.core_type<tc>, window_params = [{transform_indices = @transform_0, window_bounds = array<i64: 128, 128>}, {transform_indices = @transform_1, window_bounds = array<i64: 128, 128>}, {transform_indices = @transform_2, window_bounds = array<i64: 1, 128>}, {transform_indices = @transform_3, window_bounds = array<i64: 128, 128>}]} {
    %c0 = arith.constant 0 : index
    %c0_0 = arith.constant 0 : index
    %0 = vector.load %arg2[%c0, %c0_0] : memref<128x128xbf16, #tpu.memory_space<vmem>>, vector<128x128xbf16>
    %c0_1 = arith.constant 0 : index
    %c0_2 = arith.constant 0 : index
    %1 = vector.load %arg3[%c0_1, %c0_2] : memref<128x128xbf16, #tpu.memory_space<vmem>>, vector<128x128xbf16>
    %cst = arith.constant dense<0.000000e+00> : vector<128x128xf32>
    %2 = tpu.matmul %0, %1, %cst {dimension_numbers = #tpu.dot_dimension_numbers<[1], [0], [0], [1], [0, 0, 1, 1], [], []>} : vector<128x128xbf16>, vector<128x128xbf16>, vector<128x128xf32> -> vector<128x128xf32>
    %c0_3 = arith.constant 0 : index
    %c0_4 = arith.constant 0 : index
    %3 = vector.load %arg4[%c0_3, %c0_4] : memref<1x128xf32, #tpu.memory_space<vmem>>, vector<1x128xf32>
    %4 = vector.broadcast %3 : vector<1x128xf32> to vector<128x128xf32>
    %5 = arith.addf %2, %4 : vector<128x128xf32>
    %6 = arith.truncf %5 : vector<128x128xf32> to vector<128x128xbf16>
    %c0_5 = arith.constant 0 : index
    %c0_6 = arith.constant 0 : index
    %7 = vector.load %arg5[%c0_5, %c0_6] : memref<128x128xbf16, #tpu.memory_space<vmem>>, vector<128x128xbf16>
    tpu.vector_store %arg5[%c0_5, %c0_6], %6 {strides = array<i32>} : memref<128x128xbf16, #tpu.memory_space<vmem>>, vector<128x128xbf16>,
    return
  }
  func.func @transform_0(%arg0: i32, %arg1: i32) -> (i32, i32) {
    %c0_i32 = arith.constant 0 : i32
    %c0_i32_0 = arith.constant 0 : i32
    return %arg0, %c0_i32 : i32, i32
  }
  func.func @transform_1(%arg0: i32, %arg1: i32) -> (i32, i32) {
    %c0_i32 = arith.constant 0 : i32
    %c0_i32_0 = arith.constant 0 : i32
    return %c0_i32, %arg1 : i32, i32
  }
  func.func @transform_2(%arg0: i32, %arg1: i32) -> (i32, i32) {
    %c0_i32 = arith.constant 0 : i32
    %c0_i32_0 = arith.constant 0 : i32
    return %c0_i32, %arg1 : i32, i32
  }
  func.func @transform_3(%arg0: i32, %arg1: i32) -> (i32, i32) {
    %c0_i32 = arith.constant 0 : i32
    return %arg0, %arg1 : i32, i32
  }
}

module attributes {stable_mosaic.version = 11 : i64} {
  func.func @_fused_matmul_affine_kernel(%arg0: i32, %arg1: i32, %arg2: memref<128x128xbf16, #tpu.memory_space<vmem>>, %arg3: memref<128x128xbf16, #tpu.memory_space<vmem>>, %arg4: memref<1x128xf32, #tpu.memory_space<vmem>>, %arg5: memref<128x128xbf16, #tpu.memory_space<vmem>>, %arg6: memref<128x128xf32, #tpu.memory_space<vmem>>) attributes {dimension_semantics = [#tpu.dimension_semantics<parallel>, #tpu.dimension_semantics<parallel>], iteration_bounds = array<i64: 1, 1>, scalar_prefetch = 0 : i64, scratch_operands = 0 : i64, tpu.core_type = #tpu.core_type<tc>, window_params = [{transform_indices = @transform_0, window_bounds = array<i64: 128, 128>}, {transform_indices = @transform_1, window_bounds = array<i64: 128, 128>}, {transform_indices = @transform_2, window_bounds = array<i64: 1, 128>}, {transform_indices = @transform_3, window_bounds = array<i64: 128, 128>}, {transform_indices = @transform_4, window_bounds = array<i64: 128, 128>}]} {
    %c0 = arith.constant 0 : index
    %c0_0 = arith.constant 0 : index
    %0 = vector.load %arg2[%c0, %c0_0] : memref<128x128xbf16, #tpu.memory_space<vmem>>, vector<128x128xbf16>
    %c0_1 = arith.constant 0 : index
    %c0_2 = arith.constant 0 : index
    %1 = vector.load %arg3[%c0_1, %c0_2] : memref<128x128xbf16, #tpu.memory_space<vmem>>, vector<128x128xbf16>
    %cst = arith.constant dense<0.000000e+00> : vector<128x128xf32>
    %2 = tpu.matmul %0, %1, %cst {dimension_numbers = #tpu.dot_dimension_numbers<[1], [0], [0], [1], [0, 0, 1, 1], [], []>} : vector<128x128xbf16>, vector<128x128xbf16>, vector<128x128xf32> -> vector<128x128xf32>
    %c0_3 = arith.constant 0 : index
    %c0_4 = arith.constant 0 : index
    %3 = vector.load %arg4[%c0_3, %c0_4] : memref<1x128xf32, #tpu.memory_space<vmem>>, vector<1x128xf32>
    %4 = vector.broadcast %3 : vector<1x128xf32> to vector<128x128xf32>
    %5 = arith.addf %2, %4 : vector<128x128xf32>
    %cst_5 = arith.constant 0.000000e+00 : f32
    %6 = vector.broadcast %cst_5 : f32 to vector<128x128xf32>
    %7 = arith.maximumf %5, %6 : vector<128x128xf32>
    %c0_6 = arith.constant 0 : index
    %c0_7 = arith.constant 0 : index
    %8 = vector.load %arg5[%c0_6, %c0_7] : memref<128x128xbf16, #tpu.memory_space<vmem>>, vector<128x128xbf16>
    %9 = arith.extf %8 : vector<128x128xbf16> to vector<128x128xf32>
    %10 = arith.addf %7, %9 : vector<128x128xf32>
    %c0_8 = arith.constant 0 : index
    %c0_9 = arith.constant 0 : index
    %11 = vector.load %arg6[%c0_8, %c0_9] : memref<128x128xf32, #tpu.memory_space<vmem>>, vector<128x128xf32>
    tpu.vector_store %arg6[%c0_8, %c0_9], %10 {strides = array<i32>} : memref<128x128xf32, #tpu.memory_space<vmem>>, vector<128x128xf32>,
    return
  }
  func.func @transform_0(%arg0: i32, %arg1: i32) -> (i32, i32) {
    %c0_i32 = arith.constant 0 : i32
    %c0_i32_0 = arith.constant 0 : i32
    return %arg0, %c0_i32 : i32, i32
  }
  func.func @transform_1(%arg0: i32, %arg1: i32) -> (i32, i32) {
    %c0_i32 = arith.constant 0 : i32
    %c0_i32_0 = arith.constant 0 : i32
    return %c0_i32, %arg1 : i32, i32
  }
  func.func @transform_2(%arg0: i32, %arg1: i32) -> (i32, i32) {
    %c0_i32 = arith.constant 0 : i32
    %c0_i32_0 = arith.constant 0 : i32
    return %c0_i32, %arg1 : i32, i32
  }
  func.func @transform_3(%arg0: i32, %arg1: i32) -> (i32, i32) {
    %c0_i32 = arith.constant 0 : i32
    return %arg0, %arg1 : i32, i32
  }
  func.func @transform_4(%arg0: i32, %arg1: i32) -> (i32, i32) {
    %c0_i32 = arith.constant 0 : i32
    return %arg0, %arg1 : i32, i32
  }
}

</mosaic_0001>

<bundles_post_ra>
// kernel: res_black_forward.3
= control target key start
LH: loop header
LB: loop body
LE: loop exit
PB: predicated region body
PF: predicated region fallthrough
CT: control target
= control target key end

     0   :  { %s618_s1 = inlined_call_operand.vmem [shape: bf16[128,128], index: 1, kind: input, shape index: {}]   ;;  %s619_s0 = inlined_call_operand.vmem [shape: bf16[128,128], index: 0, kind: input, shape index: {}]   ;;  %s620_s2 = inlined_call_operand.vmem [shape: f32[1,128], index: 2, kind: input, shape index: {}]   ;;  %s621_s3 = inlined_call_operand.vmem [shape: bf16[128,128], index: 3, kind: output, shape index: {}]  }
   0x1   :  { %v507_v0 = vld [vmem:[%s618_s1] sm:$0xff]   ;;  %v508_v1 = vld [vmem:[%s618_s1 + $0x8] sm:$0xff]   ;;  %v509_v2 = vld [vmem:[%s618_s1 + $0x10] sm:$0xff]  }
   0x2   :  { %459 = vmatprep.subr.bf16.mxu0 %v507_v0  ;;  %491 = vmatprep.subr.bf16.mxu1 %v507_v0  ;;  %v510_v3 = vld [vmem:[%s618_s1 + $0x18] sm:$0xff]   ;;  %v515_v4 = vld [vmem:[%s619_s0] sm:$0xff]   ;;  %v512_v7 = vld [vmem:[%s618_s1 + $0x28] sm:$0xff]  }
   0x3   :  { %460 = vmatpush3.bf16.msra.mxu0 %v507_v0  ;;  %499 = vmatpush3.bf16.msra.mxu1 %v507_v0  ;;  %v516_v5 = vld [vmem:[%s619_s0 + $0x20] sm:$0xff]   ;;  %v513_v8 = vld [vmem:[%s618_s1 + $0x30] sm:$0xff]   ;;  %v514_v9 = vld [vmem:[%s618_s1 + $0x38] sm:$0xff]  }
   0x4   :  { %461 = vmatprep.subr.bf16.mxu0 %v508_v1  ;;  %492 = vmatprep.subr.bf16.mxu1 %v508_v1  ;;  %v511_v6 = vld [vmem:[%s618_s1 + $0x20] sm:$0xff]   ;;  %v517_v10 = vld [vmem:[%s619_s0 + $0x8] sm:$0xff]   ;;  %v519_v12 = vld [vmem:[%s619_s0 + $0x10] sm:$0xff]  }
   0x5   :  { %475 = vmatprep.mubr.bf16.mxu0 %v515_v4  ;;  %483 = vmatprep.mubr.bf16.mxu1 %v516_v5  ;;  %v518_v11 = vld [vmem:[%s619_s0 + $0x28] sm:$0xff]   ;;  %v520_v13 = vld [vmem:[%s619_s0 + $0x30] sm:$0xff]   ;;  %v521_v14 = vld [vmem:[%s619_s0 + $0x18] sm:$0xff]  }
   0x6   :  { %v522_v15 = vld [vmem:[%s619_s0 + $0x38] sm:$0xff]   ;;  %v347_v16 = vld [vmem:[%s620_s2] ss:$0 sm:$0xff] }
   0x7   :  { %462 = vmatpush3.bf16.msra.mxu0 %v508_v1  ;;  %500 = vmatpush3.bf16.msra.mxu1 %v508_v1 }
   0x8   :  { %463 = vmatprep.subr.bf16.mxu0 %v509_v2  ;;  %493 = vmatprep.subr.bf16.mxu1 %v509_v2 }
   0xb   :  { %464 = vmatpush3.bf16.msra.mxu0 %v509_v2  ;;  %501 = vmatpush3.bf16.msra.mxu1 %v509_v2 }
   0xc   :  { %465 = vmatprep.subr.bf16.mxu0 %v510_v3  ;;  %494 = vmatprep.subr.bf16.mxu1 %v510_v3 }
   0xf   :  { %466 = vmatpush3.bf16.msra.mxu0 %v510_v3  ;;  %502 = vmatpush3.bf16.msra.mxu1 %v510_v3 }
  0x10   :  { %467 = vmatprep.subr.bf16.mxu0 %v511_v6  ;;  %495 = vmatprep.subr.bf16.mxu1 %v511_v6 }
  0x13   :  { %468 = vmatpush3.bf16.msra.mxu0 %v511_v6  ;;  %503 = vmatpush3.bf16.msra.mxu1 %v511_v6 }
  0x14   :  { %469 = vmatprep.subr.bf16.mxu0 %v512_v7  ;;  %496 = vmatprep.subr.bf16.mxu1 %v512_v7 }
  0x17   :  { %470 = vmatpush3.bf16.msra.mxu0 %v512_v7  ;;  %504 = vmatpush3.bf16.msra.mxu1 %v512_v7 }
  0x18   :  { %471 = vmatprep.subr.bf16.mxu0 %v513_v8  ;;  %497 = vmatprep.subr.bf16.mxu1 %v513_v8 }
  0x1b   :  { %472 = vmatpush3.bf16.msra.mxu0 %v513_v8  ;;  %505 = vmatpush3.bf16.msra.mxu1 %v513_v8 }
  0x1c   :  { %473 = vmatprep.subr.bf16.mxu0 %v514_v9  ;;  %498 = vmatprep.subr.bf16.mxu1 %v514_v9 }
  0x1f   :  { %474 = vmatpush3.bf16.msra.mxu0 %v514_v9  ;;  %506 = vmatpush3.bf16.msra.mxu1 %v514_v9 }
  0x22   :  { %476 = vmatmul.mubr.bf16.vlgmr.msra.gmra.mrb[0].mxu0 %v517_v10  ;;  %484 = vmatmul.mubr.bf16.vlgmr.msra.gmra.mrb[0].mxu1 %v518_v11 }
  0x23   :  { %479 = vmatprep.mubr.bf16.mxu0 %v519_v12  ;;  %487 = vmatprep.mubr.bf16.mxu1 %v520_v13 }
  0x2a   :  { %480 = vmatmul.mubr.bf16.gmra.mrb[4].mxu0 %v521_v14  ;;  %488 = vmatmul.mubr.bf16.gmra.mrb[4].mxu1 %v522_v15 }
  0xf5   :  { %v477_v17 = vpop.f32.mrb[0].mxu0  ;;  %v485_v18 = vpop.f32.mrb[0].mxu1 }
  0xf6   :  { %v193_v19 = vadd.f32 %v477_v17, %v347_v16  ;;  %v225_v20 = vadd.f32 %v485_v18, %v347_v16  ;;  %v184_v21 = vpop.f32.mrb[1].mxu0  ;;  %v216_v22 = vpop.f32.mrb[1].mxu1 }
  0xf7   :  { %v185_v23 = vadd.f32 %v347_v16, %v184_v21  ;;  %v217_v24 = vadd.f32 %v347_v16, %v216_v22  ;;  %v478_v25 = vpop.f32.mrb[2].mxu0  ;;  %v486_v26 = vpop.f32.mrb[2].mxu1 }
  0xf8   :  { %v196_v27 = vadd.f32 %v478_v25, %v347_v16  ;;  %v228_v28 = vadd.f32 %v486_v26, %v347_v16  ;;  %v187_v29 = vpop.f32.mrb[3].mxu0  ;;  %v219_v30 = vpop.f32.mrb[3].mxu1  ;;  %v249_v33 = vmax.f32 %v193_v19, 0.0  ;;  %v257_v34 = vmax.f32 %v225_v20, 0.0 }
  0xf9   :  { %v188_v31 = vadd.f32 %v347_v16, %v187_v29  ;;  %v220_v32 = vadd.f32 %v347_v16, %v219_v30  ;;  %v247_v37 = vmax.f32 %v185_v23, 0.0  ;;  %v255_v38 = vmax.f32 %v217_v24, 0.0 }
  0xfa   :  { %v250_v35 = vmax.f32 %v196_v27, 0.0  ;;  %v258_v36 = vmax.f32 %v228_v28, 0.0 }
  0xfb   :  { %v248_v39 = vmax.f32 %v188_v31, 0.0  ;;  %v256_v40 = vmax.f32 %v220_v32, 0.0 }
  0xfc   :  { %v404_v41 = vpack.c.bf16 %v250_v35, %v249_v33  ;;  %v424_v42 = vpack.c.bf16 %v258_v36, %v257_v34 }
  0xfd   :  { %v399_v43 = vpack.c.bf16 %v248_v39, %v247_v37  ;;  %v419_v44 = vpack.c.bf16 %v256_v40, %v255_v38  ;;  %v481_v45 = vpop.f32.mrb[4].mxu0  ;;  %v489_v46 = vpop.f32.mrb[4].mxu1 }
  0xfe   :  { %436 = vst [vmem:[%s621_s3 + $0x8] sm:$0xff] %v404_v41   ;;  %440 = vst [vmem:[%s621_s3 + $0x28] sm:$0xff] %v424_v42   ;;  %v209_v47 = vadd.f32 %v481_v45, %v347_v16  ;;  %v241_v48 = vadd.f32 %v489_v46, %v347_v16  ;;  %v200_v49 = vpop.f32.mrb[5].mxu0  ;;  %v232_v50 = vpop.f32.mrb[5].mxu1 }
  0xff   :  { %400 = vst [vmem:[%s621_s3] sm:$0xff] %v399_v43   ;;  %439 = vst [vmem:[%s621_s3 + $0x20] sm:$0xff] %v419_v44   ;;  %v201_v51 = vadd.f32 %v347_v16, %v200_v49  ;;  %v233_v52 = vadd.f32 %v347_v16, %v232_v50  ;;  %v482_v53 = vpop.f32.mrb[6].mxu0  ;;  %v490_v54 = vpop.f32.mrb[6].mxu1 }
 0x100   :  { %v212_v55 = vadd.f32 %v482_v53, %v347_v16  ;;  %v244_v56 = vadd.f32 %v490_v54, %v347_v16  ;;  %v203_v57 = vpop.f32.mrb[7].mxu0  ;;  %v235_v58 = vpop.f32.mrb[7].mxu1  ;;  %v253_v61 = vmax.f32 %v209_v47, 0.0  ;;  %v261_v62 = vmax.f32 %v241_v48, 0.0 }
 0x101   :  { %v204_v59 = vadd.f32 %v347_v16, %v203_v57  ;;  %v236_v60 = vadd.f32 %v347_v16, %v235_v58  ;;  %v251_v1 = vmax.f32 %v201_v51, 0.0  ;;  %v259_v2 = vmax.f32 %v233_v52, 0.0 }
 0x102   :  { %v254_v63 = vmax.f32 %v212_v55, 0.0  ;;  %v262_v0 = vmax.f32 %v244_v56, 0.0 }
 0x103   :  { %v252_v3 = vmax.f32 %v204_v59, 0.0  ;;  %v260_v4 = vmax.f32 %v236_v60, 0.0 }
 0x104   :  { %v414_v5 = vpack.c.bf16 %v254_v63, %v253_v61  ;;  %v434_v6 = vpack.c.bf16 %v262_v0, %v261_v62 }
 0x105   :  { %v409_v7 = vpack.c.bf16 %v252_v3, %v251_v1  ;;  %v429_v8 = vpack.c.bf16 %v260_v4, %v259_v2 }
 0x106   :  { %438 = vst [vmem:[%s621_s3 + $0x18] sm:$0xff] %v414_v5   ;;  %442 = vst [vmem:[%s621_s3 + $0x38] sm:$0xff] %v434_v6  }
 0x107   :  { %437 = vst [vmem:[%s621_s3 + $0x10] sm:$0xff] %v409_v7   ;;  %441 = vst [vmem:[%s621_s3 + $0x30] sm:$0xff] %v429_v8  }

// kernel: res_black_forward.5
= control target key start
LH: loop header
LB: loop body
LE: loop exit
PB: predicated region body
PF: predicated region fallthrough
CT: control target
= control target key end

     0   :  { %s644_s1 = inlined_call_operand.vmem [shape: bf16[128,128], index: 1, kind: input, shape index: {}]   ;;  %s645_s0 = inlined_call_operand.vmem [shape: bf16[128,128], index: 0, kind: input, shape index: {}]   ;;  %s646_s3 = inlined_call_operand.vmem [shape: bf16[128,128], index: 3, kind: input, shape index: {}]   ;;  %s647_s2 = inlined_call_operand.vmem [shape: f32[1,128], index: 2, kind: input, shape index: {}]   ;;  %s648_s4 = inlined_call_operand.vmem [shape: f32[128,128], index: 4, kind: output, shape index: {}]  }
   0x1   :  { %v454_v0 = vld [vmem:[%s644_s1] sm:$0xff]   ;;  %v455_v1 = vld [vmem:[%s644_s1 + $0x8] sm:$0xff]   ;;  %v456_v2 = vld [vmem:[%s644_s1 + $0x10] sm:$0xff]  }
   0x2   :  { %406 = vmatprep.subr.bf16.mxu0 %v454_v0  ;;  %438 = vmatprep.subr.bf16.mxu1 %v454_v0  ;;  %v457_v3 = vld [vmem:[%s644_s1 + $0x18] sm:$0xff]   ;;  %v462_v4 = vld [vmem:[%s645_s0] sm:$0xff]   ;;  %v459_v7 = vld [vmem:[%s644_s1 + $0x28] sm:$0xff]  }
   0x3   :  { %407 = vmatpush3.bf16.msra.mxu0 %v454_v0  ;;  %446 = vmatpush3.bf16.msra.mxu1 %v454_v0  ;;  %v463_v5 = vld [vmem:[%s645_s0 + $0x20] sm:$0xff]   ;;  %v460_v8 = vld [vmem:[%s644_s1 + $0x30] sm:$0xff]   ;;  %v461_v9 = vld [vmem:[%s644_s1 + $0x38] sm:$0xff]  }
   0x4   :  { %408 = vmatprep.subr.bf16.mxu0 %v455_v1  ;;  %439 = vmatprep.subr.bf16.mxu1 %v455_v1  ;;  %v458_v6 = vld [vmem:[%s644_s1 + $0x20] sm:$0xff]   ;;  %v464_v10 = vld [vmem:[%s645_s0 + $0x8] sm:$0xff]   ;;  %v466_v12 = vld [vmem:[%s645_s0 + $0x10] sm:$0xff]  }
   0x5   :  { %422 = vmatprep.mubr.bf16.mxu0 %v462_v4  ;;  %430 = vmatprep.mubr.bf16.mxu1 %v463_v5  ;;  %v465_v11 = vld [vmem:[%s645_s0 + $0x28] sm:$0xff]   ;;  %v467_v13 = vld [vmem:[%s645_s0 + $0x30] sm:$0xff]   ;;  %v468_v14 = vld [vmem:[%s645_s0 + $0x18] sm:$0xff]  }
   0x6   :  { %v469_v15 = vld [vmem:[%s645_s0 + $0x38] sm:$0xff]   ;;  %v383_v16 = vld [vmem:[%s646_s3 + $0x8] sm:$0xff]   ;;  %v352_v18 = vld [vmem:[%s646_s3] sm:$0xff]  }
   0x7   :  { %409 = vmatpush3.bf16.msra.mxu0 %v455_v1  ;;  %447 = vmatpush3.bf16.msra.mxu1 %v455_v1  ;;  %v387_v17 = vld [vmem:[%s646_s3 + $0x28] sm:$0xff]   ;;  %v386_v19 = vld [vmem:[%s646_s3 + $0x20] sm:$0xff]   ;;  %v357_v22 = vunpack.c.l.bf16 %v383_v16  ;;  %v353_v25 = vunpack.c.l.bf16 %v352_v18  ;;  %v358_v31 = vunpack.c.h.bf16 %v383_v16  ;;  %v354_v37 = vunpack.c.h.bf16 %v352_v18  ;;  %v571_v49 = vld [vmem:[%s646_s3 + $0x18] sm:$0xff]  }
   0x8   :  { %410 = vmatprep.subr.bf16.mxu0 %v456_v2  ;;  %440 = vmatprep.subr.bf16.mxu1 %v456_v2  ;;  %v558_v20 = vld [vmem:[%s647_s2] ss:$0 sm:$0xff]  ;;  %v373_v24 = vunpack.c.l.bf16 %v387_v17  ;;  %v369_v26 = vunpack.c.l.bf16 %v386_v19  ;;  %v374_v32 = vunpack.c.h.bf16 %v387_v17  ;;  %v370_v38 = vunpack.c.h.bf16 %v386_v19  ;;  %v576_v50 = vld [vmem:[%s646_s3 + $0x38] sm:$0xff]   ;;  %v384_v55 = vld [vmem:[%s646_s3 + $0x10] sm:$0xff]  }
   0x9   :  { %v388_v56 = vld [vmem:[%s646_s3 + $0x30] sm:$0xff]   ;;  %v365_v63 = vunpack.c.l.bf16 %v571_v49  ;;  %v381_v0 = vunpack.c.l.bf16 %v576_v50  ;;  %v361_v5 = vunpack.c.l.bf16 %v384_v55  ;;  %v362_v17 = vunpack.c.h.bf16 %v384_v55 }
   0xa   :  { %v378_v18 = vunpack.c.h.bf16 %v388_v56 }
   0xb   :  { %411 = vmatpush3.bf16.msra.mxu0 %v456_v2  ;;  %448 = vmatpush3.bf16.msra.mxu1 %v456_v2 }
   0xc   :  { %412 = vmatprep.subr.bf16.mxu0 %v457_v3  ;;  %441 = vmatprep.subr.bf16.mxu1 %v457_v3 }
   0xf   :  { %413 = vmatpush3.bf16.msra.mxu0 %v457_v3  ;;  %449 = vmatpush3.bf16.msra.mxu1 %v457_v3 }
  0x10   :  { %414 = vmatprep.subr.bf16.mxu0 %v458_v6  ;;  %442 = vmatprep.subr.bf16.mxu1 %v458_v6 }
  0x13   :  { %415 = vmatpush3.bf16.msra.mxu0 %v458_v6  ;;  %450 = vmatpush3.bf16.msra.mxu1 %v458_v6  ;;  %v377_v6 = vunpack.c.l.bf16 %v388_v56 }
  0x14   :  { %416 = vmatprep.subr.bf16.mxu0 %v459_v7  ;;  %443 = vmatprep.subr.bf16.mxu1 %v459_v7 }
  0x17   :  { %417 = vmatpush3.bf16.msra.mxu0 %v459_v7  ;;  %451 = vmatpush3.bf16.msra.mxu1 %v459_v7 }
  0x18   :  { %418 = vmatprep.subr.bf16.mxu0 %v460_v8  ;;  %444 = vmatprep.subr.bf16.mxu1 %v460_v8 }
  0x1b   :  { %419 = vmatpush3.bf16.msra.mxu0 %v460_v8  ;;  %452 = vmatpush3.bf16.msra.mxu1 %v460_v8 }
  0x1c   :  { %420 = vmatprep.subr.bf16.mxu0 %v461_v9  ;;  %445 = vmatprep.subr.bf16.mxu1 %v461_v9 }
  0x1f   :  { %421 = vmatpush3.bf16.msra.mxu0 %v461_v9  ;;  %453 = vmatpush3.bf16.msra.mxu1 %v461_v9 }
  0x22   :  { %423 = vmatmul.mubr.bf16.vlgmr.msra.gmra.mrb[0].mxu0 %v464_v10  ;;  %431 = vmatmul.mubr.bf16.vlgmr.msra.gmra.mrb[0].mxu1 %v465_v11  ;;  %v366_v11 = vunpack.c.h.bf16 %v571_v49 }
  0x23   :  { %426 = vmatprep.mubr.bf16.mxu0 %v466_v12  ;;  %434 = vmatprep.mubr.bf16.mxu1 %v467_v13  ;;  %v382_v12 = vunpack.c.h.bf16 %v576_v50 }
  0x2a   :  { %427 = vmatmul.mubr.bf16.gmra.mrb[4].mxu0 %v468_v14  ;;  %435 = vmatmul.mubr.bf16.gmra.mrb[4].mxu1 %v469_v15 }
  0xf5   :  { %v424_v21 = vpop.f32.mrb[0].mxu0  ;;  %v432_v23 = vpop.f32.mrb[0].mxu1 }
  0xf6   :  { %v196_v27 = vadd.f32 %v424_v21, %v558_v20  ;;  %v228_v28 = vadd.f32 %v432_v23, %v558_v20  ;;  %v187_v29 = vpop.f32.mrb[1].mxu0  ;;  %v219_v30 = vpop.f32.mrb[1].mxu1 }
  0xf7   :  { %v188_v33 = vadd.f32 %v558_v20, %v187_v29  ;;  %v220_v34 = vadd.f32 %v558_v20, %v219_v30  ;;  %v425_v35 = vpop.f32.mrb[2].mxu0  ;;  %v433_v36 = vpop.f32.mrb[2].mxu1 }
  0xf8   :  { %v252_v39 = vmax.f32 %v196_v27, 0.0  ;;  %v260_v40 = vmax.f32 %v228_v28, 0.0  ;;  %v199_v41 = vadd.f32 %v425_v35, %v558_v20  ;;  %v231_v42 = vadd.f32 %v433_v36, %v558_v20  ;;  %v190_v43 = vpop.f32.mrb[3].mxu0  ;;  %v222_v44 = vpop.f32.mrb[3].mxu1 }
  0xf9   :  { %v250_v45 = vmax.f32 %v188_v33, 0.0  ;;  %v258_v46 = vmax.f32 %v220_v34, 0.0  ;;  %v191_v47 = vadd.f32 %v558_v20, %v190_v43  ;;  %v223_v48 = vadd.f32 %v558_v20, %v222_v44 }
  0xfa   :  { %v300_v51 = vadd.f32 %v357_v22, %v252_v39  ;;  %v308_v52 = vadd.f32 %v373_v24, %v260_v40  ;;  %v253_v53 = vmax.f32 %v199_v41, 0.0  ;;  %v261_v54 = vmax.f32 %v231_v42, 0.0 }
  0xfb   :  { %v298_v57 = vadd.f32 %v353_v25, %v250_v45  ;;  %v306_v58 = vadd.f32 %v369_v26, %v258_v46  ;;  %v251_v59 = vmax.f32 %v191_v47, 0.0  ;;  %v259_v60 = vmax.f32 %v223_v48, 0.0 }
  0xfc   :  { %316 = vst [vmem:[%s648_s4 + $0x10] sm:$0xff] %v300_v51  ;;  %324 = vst [vmem:[%s648_s4 + $0x50] sm:$0xff] %v308_v52  ;;  %v301_v61 = vadd.f32 %v358_v31, %v253_v53  ;;  %v309_v62 = vadd.f32 %v374_v32, %v261_v54 }
  0xfd   :  { %314 = vst [vmem:[%s648_s4] sm:$0xff] %v298_v57  ;;  %322 = vst [vmem:[%s648_s4 + $0x40] sm:$0xff] %v306_v58  ;;  %v299_v1 = vadd.f32 %v354_v37, %v251_v59  ;;  %v307_v2 = vadd.f32 %v370_v38, %v259_v60  ;;  %v428_v3 = vpop.f32.mrb[4].mxu0  ;;  %v436_v4 = vpop.f32.mrb[4].mxu1 }
  0xfe   :  { %317 = vst [vmem:[%s648_s4 + $0x18] sm:$0xff] %v301_v61  ;;  %325 = vst [vmem:[%s648_s4 + $0x58] sm:$0xff] %v309_v62  ;;  %v212_v7 = vadd.f32 %v428_v3, %v558_v20  ;;  %v244_v8 = vadd.f32 %v436_v4, %v558_v20  ;;  %v203_v9 = vpop.f32.mrb[5].mxu0  ;;  %v235_v10 = vpop.f32.mrb[5].mxu1 }
  0xff   :  { %315 = vst [vmem:[%s648_s4 + $0x8] sm:$0xff] %v299_v1  ;;  %323 = vst [vmem:[%s648_s4 + $0x48] sm:$0xff] %v307_v2  ;;  %v204_v13 = vadd.f32 %v558_v20, %v203_v9  ;;  %v236_v14 = vadd.f32 %v558_v20, %v235_v10  ;;  %v429_v15 = vpop.f32.mrb[6].mxu0  ;;  %v437_v16 = vpop.f32.mrb[6].mxu1 }
 0x100   :  { %v256_v19 = vmax.f32 %v212_v7, 0.0  ;;  %v264_v21 = vmax.f32 %v244_v8, 0.0  ;;  %v215_v22 = vadd.f32 %v429_v15, %v558_v20  ;;  %v247_v23 = vadd.f32 %v437_v16, %v558_v20  ;;  %v206_v24 = vpop.f32.mrb[7].mxu0  ;;  %v238_v25 = vpop.f32.mrb[7].mxu1 }
 0x101   :  { %v254_v26 = vmax.f32 %v204_v13, 0.0  ;;  %v262_v27 = vmax.f32 %v236_v14, 0.0  ;;  %v207_v28 = vadd.f32 %v558_v20, %v206_v24  ;;  %v239_v29 = vadd.f32 %v558_v20, %v238_v25 }
 0x102   :  { %v304_v30 = vadd.f32 %v365_v63, %v256_v19  ;;  %v312_v31 = vadd.f32 %v381_v0, %v264_v21  ;;  %v257_v32 = vmax.f32 %v215_v22, 0.0  ;;  %v265_v33 = vmax.f32 %v247_v23, 0.0 }
 0x103   :  { %v302_v34 = vadd.f32 %v361_v5, %v254_v26  ;;  %v310_v35 = vadd.f32 %v377_v6, %v262_v27  ;;  %v255_v36 = vmax.f32 %v207_v28, 0.0  ;;  %v263_v37 = vmax.f32 %v239_v29, 0.0 }
 0x104   :  { %320 = vst [vmem:[%s648_s4 + $0x30] sm:$0xff] %v304_v30  ;;  %328 = vst [vmem:[%s648_s4 + $0x70] sm:$0xff] %v312_v31  ;;  %v305_v38 = vadd.f32 %v366_v11, %v257_v32  ;;  %v313_v39 = vadd.f32 %v382_v12, %v265_v33 }
 0x105   :  { %318 = vst [vmem:[%s648_s4 + $0x20] sm:$0xff] %v302_v34  ;;  %326 = vst [vmem:[%s648_s4 + $0x60] sm:$0xff] %v310_v35  ;;  %v303_v20 = vadd.f32 %v362_v17, %v255_v36  ;;  %v311_v40 = vadd.f32 %v378_v18, %v263_v37 }
 0x106   :  { %321 = vst [vmem:[%s648_s4 + $0x38] sm:$0xff] %v305_v38  ;;  %329 = vst [vmem:[%s648_s4 + $0x78] sm:$0xff] %v313_v39 }
 0x107   :  { %319 = vst [vmem:[%s648_s4 + $0x28] sm:$0xff] %v303_v20  ;;  %327 = vst [vmem:[%s648_s4 + $0x68] sm:$0xff] %v311_v40 }

// kernel: res_black_forward.4
= control target key start
LH: loop header
LB: loop body
LE: loop exit
PB: predicated region body
PF: predicated region fallthrough
CT: control target
= control target key end

     0   :  { %s602_s1 = inlined_call_operand.vmem [shape: bf16[128,128], index: 1, kind: input, shape index: {}]   ;;  %s603_s0 = inlined_call_operand.vmem [shape: bf16[128,128], index: 0, kind: input, shape index: {}]   ;;  %s604_s2 = inlined_call_operand.vmem [shape: f32[1,128], index: 2, kind: input, shape index: {}]   ;;  %s605_s3 = inlined_call_operand.vmem [shape: bf16[128,128], index: 3, kind: output, shape index: {}]  }
   0x1   :  { %v491_v0 = vld [vmem:[%s602_s1] sm:$0xff]   ;;  %v492_v1 = vld [vmem:[%s602_s1 + $0x8] sm:$0xff]   ;;  %v493_v2 = vld [vmem:[%s602_s1 + $0x10] sm:$0xff]  }
   0x2   :  { %443 = vmatprep.subr.bf16.mxu0 %v491_v0  ;;  %475 = vmatprep.subr.bf16.mxu1 %v491_v0  ;;  %v494_v3 = vld [vmem:[%s602_s1 + $0x18] sm:$0xff]   ;;  %v499_v4 = vld [vmem:[%s603_s0] sm:$0xff]   ;;  %v496_v7 = vld [vmem:[%s602_s1 + $0x28] sm:$0xff]  }
   0x3   :  { %444 = vmatpush3.bf16.msra.mxu0 %v491_v0  ;;  %483 = vmatpush3.bf16.msra.mxu1 %v491_v0  ;;  %v500_v5 = vld [vmem:[%s603_s0 + $0x20] sm:$0xff]   ;;  %v497_v8 = vld [vmem:[%s602_s1 + $0x30] sm:$0xff]   ;;  %v498_v9 = vld [vmem:[%s602_s1 + $0x38] sm:$0xff]  }
   0x4   :  { %445 = vmatprep.subr.bf16.mxu0 %v492_v1  ;;  %476 = vmatprep.subr.bf16.mxu1 %v492_v1  ;;  %v495_v6 = vld [vmem:[%s602_s1 + $0x20] sm:$0xff]   ;;  %v501_v10 = vld [vmem:[%s603_s0 + $0x8] sm:$0xff]   ;;  %v503_v12 = vld [vmem:[%s603_s0 + $0x10] sm:$0xff]  }
   0x5   :  { %459 = vmatprep.mubr.bf16.mxu0 %v499_v4  ;;  %467 = vmatprep.mubr.bf16.mxu1 %v500_v5  ;;  %v502_v11 = vld [vmem:[%s603_s0 + $0x28] sm:$0xff]   ;;  %v504_v13 = vld [vmem:[%s603_s0 + $0x30] sm:$0xff]   ;;  %v505_v14 = vld [vmem:[%s603_s0 + $0x18] sm:$0xff]  }
   0x6   :  { %v506_v15 = vld [vmem:[%s603_s0 + $0x38] sm:$0xff]   ;;  %v331_v17 = vld [vmem:[%s604_s2] ss:$0 sm:$0xff] }
   0x7   :  { %446 = vmatpush3.bf16.msra.mxu0 %v492_v1  ;;  %484 = vmatpush3.bf16.msra.mxu1 %v492_v1 }
   0x8   :  { %447 = vmatprep.subr.bf16.mxu0 %v493_v2  ;;  %477 = vmatprep.subr.bf16.mxu1 %v493_v2 }
   0xb   :  { %448 = vmatpush3.bf16.msra.mxu0 %v493_v2  ;;  %485 = vmatpush3.bf16.msra.mxu1 %v493_v2 }
   0xc   :  { %449 = vmatprep.subr.bf16.mxu0 %v494_v3  ;;  %478 = vmatprep.subr.bf16.mxu1 %v494_v3 }
   0xf   :  { %450 = vmatpush3.bf16.msra.mxu0 %v494_v3  ;;  %486 = vmatpush3.bf16.msra.mxu1 %v494_v3 }
  0x10   :  { %451 = vmatprep.subr.bf16.mxu0 %v495_v6  ;;  %479 = vmatprep.subr.bf16.mxu1 %v495_v6 }
  0x13   :  { %452 = vmatpush3.bf16.msra.mxu0 %v495_v6  ;;  %487 = vmatpush3.bf16.msra.mxu1 %v495_v6 }
  0x14   :  { %453 = vmatprep.subr.bf16.mxu0 %v496_v7  ;;  %480 = vmatprep.subr.bf16.mxu1 %v496_v7 }
  0x17   :  { %454 = vmatpush3.bf16.msra.mxu0 %v496_v7  ;;  %488 = vmatpush3.bf16.msra.mxu1 %v496_v7 }
  0x18   :  { %455 = vmatprep.subr.bf16.mxu0 %v497_v8  ;;  %481 = vmatprep.subr.bf16.mxu1 %v497_v8 }
  0x1b   :  { %456 = vmatpush3.bf16.msra.mxu0 %v497_v8  ;;  %489 = vmatpush3.bf16.msra.mxu1 %v497_v8 }
  0x1c   :  { %457 = vmatprep.subr.bf16.mxu0 %v498_v9  ;;  %482 = vmatprep.subr.bf16.mxu1 %v498_v9 }
  0x1f   :  { %458 = vmatpush3.bf16.msra.mxu0 %v498_v9  ;;  %490 = vmatpush3.bf16.msra.mxu1 %v498_v9 }
  0x22   :  { %460 = vmatmul.mubr.bf16.vlgmr.msra.gmra.mrb[0].mxu0 %v501_v10  ;;  %468 = vmatmul.mubr.bf16.vlgmr.msra.gmra.mrb[0].mxu1 %v502_v11 }
  0x23   :  { %463 = vmatprep.mubr.bf16.mxu0 %v503_v12  ;;  %471 = vmatprep.mubr.bf16.mxu1 %v504_v13 }
  0x2a   :  { %464 = vmatmul.mubr.bf16.gmra.mrb[4].mxu0 %v505_v14  ;;  %472 = vmatmul.mubr.bf16.gmra.mrb[4].mxu1 %v506_v15 }
  0xf5   :  { %v461_v16 = vpop.f32.mrb[0].mxu0  ;;  %v469_v18 = vpop.f32.mrb[0].mxu1 }
  0xf6   :  { %v184_v19 = vpop.f32.mrb[1].mxu0  ;;  %v216_v20 = vpop.f32.mrb[1].mxu1  ;;  %v193_v23 = vadd.f32 %v461_v16, %v331_v17  ;;  %v225_v24 = vadd.f32 %v469_v18, %v331_v17 }
  0xf7   :  { %v462_v21 = vpop.f32.mrb[2].mxu0  ;;  %v470_v22 = vpop.f32.mrb[2].mxu1  ;;  %v185_v29 = vadd.f32 %v331_v17, %v184_v19  ;;  %v217_v30 = vadd.f32 %v331_v17, %v216_v20 }
  0xf8   :  { %v196_v25 = vadd.f32 %v462_v21, %v331_v17  ;;  %v228_v26 = vadd.f32 %v470_v22, %v331_v17  ;;  %v187_v27 = vpop.f32.mrb[3].mxu0  ;;  %v219_v28 = vpop.f32.mrb[3].mxu1 }
  0xf9   :  { %v188_v31 = vadd.f32 %v331_v17, %v187_v27  ;;  %v220_v32 = vadd.f32 %v331_v17, %v219_v28 }
  0xfa   :  { %v388_v33 = vpack.c.bf16 %v196_v25, %v193_v23  ;;  %v408_v34 = vpack.c.bf16 %v228_v26, %v225_v24 }
  0xfb   :  { %v383_v35 = vpack.c.bf16 %v188_v31, %v185_v29  ;;  %v403_v36 = vpack.c.bf16 %v220_v32, %v217_v30 }
  0xfc   :  { %420 = vst [vmem:[%s605_s3 + $0x8] sm:$0xff] %v388_v33   ;;  %424 = vst [vmem:[%s605_s3 + $0x28] sm:$0xff] %v408_v34  }
  0xfd   :  { %384 = vst [vmem:[%s605_s3] sm:$0xff] %v383_v35   ;;  %423 = vst [vmem:[%s605_s3 + $0x20] sm:$0xff] %v403_v36   ;;  %v465_v37 = vpop.f32.mrb[4].mxu0  ;;  %v473_v38 = vpop.f32.mrb[4].mxu1 }
  0xfe   :  { %v200_v39 = vpop.f32.mrb[5].mxu0  ;;  %v232_v40 = vpop.f32.mrb[5].mxu1  ;;  %v209_v43 = vadd.f32 %v465_v37, %v331_v17  ;;  %v241_v44 = vadd.f32 %v473_v38, %v331_v17 }
  0xff   :  { %v466_v41 = vpop.f32.mrb[6].mxu0  ;;  %v474_v42 = vpop.f32.mrb[6].mxu1  ;;  %v201_v49 = vadd.f32 %v331_v17, %v200_v39  ;;  %v233_v50 = vadd.f32 %v331_v17, %v232_v40 }
 0x100   :  { %v212_v45 = vadd.f32 %v466_v41, %v331_v17  ;;  %v244_v46 = vadd.f32 %v474_v42, %v331_v17  ;;  %v203_v47 = vpop.f32.mrb[7].mxu0  ;;  %v235_v48 = vpop.f32.mrb[7].mxu1 }
 0x101   :  { %v204_v51 = vadd.f32 %v331_v17, %v203_v47  ;;  %v236_v52 = vadd.f32 %v331_v17, %v235_v48 }
 0x102   :  { %v398_v53 = vpack.c.bf16 %v212_v45, %v209_v43  ;;  %v418_v54 = vpack.c.bf16 %v244_v46, %v241_v44 }
 0x103   :  { %v393_v55 = vpack.c.bf16 %v204_v51, %v201_v49  ;;  %v413_v56 = vpack.c.bf16 %v236_v52, %v233_v50 }
 0x104   :  { %422 = vst [vmem:[%s605_s3 + $0x18] sm:$0xff] %v398_v53   ;;  %426 = vst [vmem:[%s605_s3 + $0x38] sm:$0xff] %v418_v54  }
 0x105   :  { %421 = vst [vmem:[%s605_s3 + $0x10] sm:$0xff] %v393_v55   ;;  %425 = vst [vmem:[%s605_s3 + $0x30] sm:$0xff] %v413_v56  }

</bundles_post_ra>
